<compile_context>
chip_gen: v7x
topology: tpu7x:2x2x1
jax: 0.10.0
libtpu: 0.0.40
codegen_flags: <defaults>
</compile_context>

<pallas_src>
import functools

import jax
import jax.numpy as jnp
from jax.experimental import pallas as pl
from jax.experimental.pallas import tpu as pltpu


# ----------------------------------------------------------------------------
# helpers
# ----------------------------------------------------------------------------
def _round_up(n, m):
    return ((n + m - 1) // m) * m


def _pad_to_shape(a, shape):
    pads = [(0, t - s) for s, t in zip(a.shape, shape)]
    return jnp.pad(a, pads)


def _pick_batch_tile(B, L):
    """Fold batch to grow the matmul M-dim; only split into >=2 parallel grid
    steps (for v7x's two TensorCores) when each step still has >=128 rows."""
    if B % 2 == 0 and (B // 2) * L >= 128:
        return B // 2
    return B


# ----------------------------------------------------------------------------
# fused TCN kernel (all temporal blocks in one invocation)
# ----------------------------------------------------------------------------
def _encoder_tcn_kernel(*refs, layer_meta, Bt, L, Cpad, compute_dtype):
    """refs = [x_ref, <per-layer weight refs...>, out_ref]

    x_ref   : (Bt, L, Cpad)            f32 channel-padded input, (B, L, C)
    per layer (statically unrolled):
      w1    : (K*Cpad, Cpad)  compute_dtype  tap-major fused dilated conv 1
      b1    : (1, Cpad)       f32
      w2    : (K*Cpad, Cpad)  compute_dtype  tap-major fused dilated conv 2
      b2    : (1, Cpad)       f32
      [wd   : (Cpad, Cpad)    compute_dtype  1x1 residual conv (only if used)
       bd   : (1, Cpad)       f32]
    out_ref : (num_layers, Bt, L, Cpad) f32   every block's output
    """
    x_ref = refs[0]
    out_ref = refs[-1]
    wrefs = refs[1:-1]

    # Running activation stays on-chip across all layers.
    h = x_ref[...].astype(jnp.float32)                      # (Bt, L, Cpad)

    def _taps(v, K, d):
        """(Bt, L, Cpad) -> (Bt*L, K*Cpad) operand of the fused dilated
        causal conv.  Tap k multiplies x[t - (K-1-k)*d]; causal left padding
        is realized by zeroing the first (K-1-k)*d rows of each shifted view
        (no wrapper jnp.pad, no VMEM scratch round trip)."""
        parts = []
        for k in range(K):
            s = (K - 1 - k) * d
            if s == 0:
                parts.append(v)
            elif s >= L:
                parts.append(jnp.zeros((Bt, L, Cpad), v.dtype))
            else:
                parts.append(jnp.concatenate(
                    [jnp.zeros((Bt, s, Cpad), v.dtype), v[:, :L - s, :]],
                    axis=1))
        cat = jnp.concatenate(parts, axis=-1)               # (Bt, L, K*Cpad)
        return cat.reshape(Bt * L, K * Cpad).astype(compute_dtype)

    idx = 0
    for li, (K, d, has_ds) in enumerate(layer_meta):
        w1 = wrefs[idx]; b1 = wrefs[idx + 1]
        w2 = wrefs[idx + 2]; b2 = wrefs[idx + 3]
        idx += 4
        if has_ds:
            wd = wrefs[idx]; bd = wrefs[idx + 1]
            idx += 2

        # conv1: single MXU contraction over the folded (tap, channel) axis.
        h1 = jnp.dot(_taps(h, K, d), w1[...],
                     preferred_element_type=jnp.float32)    # (Bt*L, Cpad)
        h1 = jnp.maximum(h1 + b1[...], 0.0).reshape(Bt, L, Cpad)

        # conv2
        h2 = jnp.dot(_taps(h1, K, d), w2[...],
                     preferred_element_type=jnp.float32)    # (Bt*L, Cpad)
        h2 = jnp.maximum(h2 + b2[...], 0.0)

        # residual connection
        x_flat = h.reshape(Bt * L, Cpad)
        if has_ds:
            res = jnp.dot(x_flat.astype(compute_dtype), wd[...],
                          preferred_element_type=jnp.float32) + bd[...]
        else:
            res = x_flat                                    # C_in == C_out

        h = jnp.maximum(h2 + res, 0.0).reshape(Bt, L, Cpad)
        out_ref[li] = h.astype(out_ref.dtype)               # lane-dense store


# ----------------------------------------------------------------------------
# parameter packing (done once, outside the kernel)
# ----------------------------------------------------------------------------
def pack_params(block_params, num_input_channels, compute_dtype=jnp.bfloat16):
    """Pad channel dims to a multiple of 128 and fuse the tap axis into the
    contraction dim of each conv weight."""
    chans = [num_input_channels] + [int(p["w1"].shape[2]) for p in block_params]
    chans += [int(p["w2"].shape[2]) for p in block_params]
    Cpad = _round_up(max(chans), 128)

    flat_args, layer_meta, out_channels = [], [], []
    c_in = num_input_channels
    for p in block_params:
        K, d = int(p["K"]), int(p["d"])
        c_out = int(p["w2"].shape[2])
        has_ds = p["wd"] is not None
        if not has_ds:
            assert c_in == c_out, (
                "identity residual requires C_in == C_out; provide a 1x1 "
                "downsample conv otherwise")

        w1f = _pad_to_shape(p["w1"], (K, Cpad, Cpad)) \
            .reshape(K * Cpad, Cpad).astype(compute_dtype)
        b1p = _pad_to_shape(p["b1"], (1, Cpad)).astype(jnp.float32)
        w2f = _pad_to_shape(p["w2"], (K, Cpad, Cpad)) \
            .reshape(K * Cpad, Cpad).astype(compute_dtype)
        b2p = _pad_to_shape(p["b2"], (1, Cpad)).astype(jnp.float32)
        flat_args += [w1f, b1p, w2f, b2p]
        if has_ds:
            wdp = _pad_to_shape(p["wd"], (Cpad, Cpad)).astype(compute_dtype)
            bdp = _pad_to_shape(p["bd"], (1, Cpad)).astype(jnp.float32)
            flat_args += [wdp, bdp]

        layer_meta.append((K, d, has_ds))
        out_channels.append(c_out)
        c_in = c_out

    return dict(Cpad=Cpad, layer_meta=tuple(layer_meta),
                out_channels=tuple(out_channels), flat_args=flat_args,
                compute_dtype=compute_dtype)


# ----------------------------------------------------------------------------
# wrapper
# ----------------------------------------------------------------------------
def encoder_forward(x_ncl, packed):
    """Encoder.forward equivalent.

    x_ncl: (B, C_in, L) like the PyTorch module.
    Returns {'features': (B, L, C_last), 'block_outputs': [(B, L, C_i), ...]}
    (the post-transpose layout produced by the PyTorch Encoder).
    """
    B, C_in, L = x_ncl.shape
    Cpad = packed["Cpad"]
    layer_meta = packed["layer_meta"]
    num_layers = len(layer_meta)

    # glue: NCL -> (B, L, C), zero-pad channels to the lane-dense width.
    x_blc = jnp.transpose(x_ncl, (0, 2, 1)).astype(jnp.float32)
    x_p = jnp.pad(x_blc, ((0, 0), (0, 0), (0, Cpad - C_in)))

    Bt = _pick_batch_tile(B, L)
    grid = (B // Bt,)

    kernel = functools.partial(
        _encoder_tcn_kernel, layer_meta=layer_meta, Bt=Bt, L=L, Cpad=Cpad,
        compute_dtype=packed["compute_dtype"])

    in_specs = [pl.BlockSpec((Bt, L, Cpad), lambda b: (b, 0, 0))]
    for a in packed["flat_args"]:
        in_specs.append(
            pl.BlockSpec(a.shape, lambda b, n=a.ndim: (0,) * n))

    # Kernel footprint is KB-scale here, well under the default scoped VMEM
    # on v5e/v6e/v7x; for production L/C add an L-tiling grid axis with a
    # causal halo and set vmem_limit_bytes explicitly.
    out = pl.pallas_call(
        kernel,
        out_shape=jax.ShapeDtypeStruct((num_layers, B, L, Cpad), jnp.float32),
        grid=grid,
        in_specs=in_specs,
        out_specs=pl.BlockSpec((num_layers, Bt, L, Cpad),
                               lambda b: (0, b, 0, 0)),
        compiler_params=pltpu.CompilerParams(
            dimension_semantics=("parallel",)),
    )(x_p, *packed["flat_args"])

    block_outputs = [out[i, :, :, :c]
                     for i, c in enumerate(packed["out_channels"])]
    return {"features": block_outputs[-1], "block_outputs": block_outputs}


# ----------------------------------------------------------------------------
# synthetic parameters + pure-JAX reference (for self-check)
# ----------------------------------------------------------------------------
def make_params(key, num_input_channels, embedding_sizes, kernel_size,
                dilations):
    """Deterministic synthetic TCN parameters (no checkpoint load)."""
    block_params = []
    c_in = num_input_channels
    for i, c_out in enumerate(embedding_sizes):
        d = dilations[i]
        key, k1, k2, k3 = jax.random.split(key, 4)
        w1 = 0.1 * jax.random.normal(k1, (kernel_size, c_in, c_out),
                                     dtype=jnp.float32)
        b1 = jnp.zeros((1, c_out), jnp.float32)
        w2 = 0.1 * jax.random.normal(k2, (kernel_size, c_out, c_out),
                                     dtype=jnp.float32)
        b2 = jnp.zeros((1, c_out), jnp.float32)
        if c_in != c_out:
            wd = 0.1 * jax.random.normal(k3, (c_in, c_out), dtype=jnp.float32)
            bd = jnp.zeros((1, c_out), jnp.float32)
        else:
            wd, bd = None, None
        block_params.append(dict(w1=w1, b1=b1, w2=w2, b2=b2, wd=wd, bd=bd,
                                 K=kernel_size, d=d))
        c_in = c_out
    return block_params


def reference_forward(x_ncl, block_params):
    """Pure-JAX float32 reference of the same forward pass."""
    h = jnp.transpose(x_ncl, (0, 2, 1)).astype(jnp.float32)   # (B, L, C)
    L = h.shape[1]
    outs = []
    for p in block_params:
        K, d = p["K"], p["d"]
        pad = (K - 1) * d
        hp = jnp.pad(h, ((0, 0), (pad, 0), (0, 0)))
        h1 = sum(jnp.einsum("blc,cf->blf", hp[:, k * d:k * d + L, :],
                            p["w1"][k]) for k in range(K)) + p["b1"]
        h1 = jnp.maximum(h1, 0.0)
        h1p = jnp.pad(h1, ((0, 0), (pad, 0), (0, 0)))
        h2 = sum(jnp.einsum("blc,cf->blf", h1p[:, k * d:k * d + L, :],
                            p["w2"][k]) for k in range(K)) + p["b2"]
        h2 = jnp.maximum(h2, 0.0)
        if p["wd"] is not None:
            res = jnp.einsum("blc,cf->blf", h, p["wd"]) + p["bd"]
        else:
            res = h
        h = jnp.maximum(h2 + res, 0.0)
        outs.append(h)
    return {"features": h, "block_outputs": outs}


# ----------------------------------------------------------------------------
if __name__ == "__main__":
    # Small shapes consistent with the module's __init__ hyper-parameters.
    B, C_IN, L = 2, 4, 16
    EMBEDDING_SIZES = [8, 8]      # encoder_embedding_sizes
    KERNEL_SIZE = 3               # encoder_kernel_size
    DILATIONS = [1, 2]            # encoder_dilations

    key = jax.random.PRNGKey(0)
    key, kx = jax.random.split(key)
    x = jax.random.normal(kx, (B, C_IN, L), dtype=jnp.float32)  # NCL input

    params = make_params(key, C_IN, EMBEDDING_SIZES, KERNEL_SIZE, DILATIONS)
    packed = pack_params(params, C_IN)            # one-time weight packing

    out = encoder_forward(x, packed)
    jax.block_until_ready(out["features"])
    for bo in out["block_outputs"]:
        jax.block_until_ready(bo)

    # shape checks
    assert out["features"].shape == (B, L, EMBEDDING_SIZES[-1])
    assert [bo.shape for bo in out["block_outputs"]] == \
        [(B, L, c) for c in EMBEDDING_SIZES]

    # numeric self-check vs pure-JAX f32 reference (bf16 MXU feed -> loose tol)
    ref = reference_forward(x, params)
    for i, (got, want) in enumerate(zip(out["block_outputs"],
                                        ref["block_outputs"])):
        assert jnp.allclose(got, want, rtol=5e-2, atol=5e-2), \
            f"block {i} mismatch"
    assert jnp.allclose(out["features"], ref["features"],
                        rtol=5e-2, atol=5e-2), "features mismatch"

    print("KERNEL_OK")
</pallas_src>

<mosaic_0001>
module attributes {stable_mosaic.version = 11 : i64} {
  func.func @_encoder_tcn_kernel(%arg0: i32, %arg1: memref<2x16x128xf32, #tpu.memory_space<vmem>>, %arg2: memref<384x128xbf16, #tpu.memory_space<vmem>>, %arg3: memref<1x128xf32, #tpu.memory_space<vmem>>, %arg4: memref<384x128xbf16, #tpu.memory_space<vmem>>, %arg5: memref<1x128xf32, #tpu.memory_space<vmem>>, %arg6: memref<128x128xbf16, #tpu.memory_space<vmem>>, %arg7: memref<1x128xf32, #tpu.memory_space<vmem>>, %arg8: memref<384x128xbf16, #tpu.memory_space<vmem>>, %arg9: memref<1x128xf32, #tpu.memory_space<vmem>>, %arg10: memref<384x128xbf16, #tpu.memory_space<vmem>>, %arg11: memref<1x128xf32, #tpu.memory_space<vmem>>, %arg12: memref<2x2x16x128xf32, #tpu.memory_space<vmem>>) attributes {dimension_semantics = [#tpu.dimension_semantics<parallel>], iteration_bounds = array<i64: 1>, scalar_prefetch = 0 : i64, scratch_operands = 0 : i64, tpu.core_type = #tpu.core_type<tc>, window_params = [{transform_indices = @transform_0, window_bounds = array<i64: 2, 16, 128>}, {pipeline_mode = #tpu.pipeline_mode<synchronous>, transform_indices = @transform_1, window_bounds = array<i64: 384, 128>}, {pipeline_mode = #tpu.pipeline_mode<synchronous>, transform_indices = @transform_2, window_bounds = array<i64: 1, 128>}, {pipeline_mode = #tpu.pipeline_mode<synchronous>, transform_indices = @transform_3, window_bounds = array<i64: 384, 128>}, {pipeline_mode = #tpu.pipeline_mode<synchronous>, transform_indices = @transform_4, window_bounds = array<i64: 1, 128>}, {pipeline_mode = #tpu.pipeline_mode<synchronous>, transform_indices = @transform_5, window_bounds = array<i64: 128, 128>}, {pipeline_mode = #tpu.pipeline_mode<synchronous>, transform_indices = @transform_6, window_bounds = array<i64: 1, 128>}, {pipeline_mode = #tpu.pipeline_mode<synchronous>, transform_indices = @transform_7, window_bounds = array<i64: 384, 128>}, {pipeline_mode = #tpu.pipeline_mode<synchronous>, transform_indices = @transform_8, window_bounds = array<i64: 1, 128>}, {pipeline_mode = #tpu.pipeline_mode<synchronous>, transform_indices = @transform_9, window_bounds = array<i64: 384, 128>}, {pipeline_mode = #tpu.pipeline_mode<synchronous>, transform_indices = @transform_10, window_bounds = array<i64: 1, 128>}, {transform_indices = @transform_11, window_bounds = array<i64: 2, 2, 16, 128>}]} {
    %c0 = arith.constant 0 : index
    %c0_0 = arith.constant 0 : index
    %c0_1 = arith.constant 0 : index
    %0 = vector.load %arg1[%c0, %c0_0, %c0_1] : memref<2x16x128xf32, #tpu.memory_space<vmem>>, vector<2x16x128xf32>
    %cst = arith.constant 0.000000e+00 : f32
    %1 = vector.broadcast %cst : f32 to vector<2x2x128xf32>
    %2 = vector.extract_strided_slice %0 {offsets = [0, 0, 0], sizes = [2, 14, 128], strides = [1, 1, 1]} : vector<2x16x128xf32> to vector<2x14x128xf32>
    %3 = tpu.concatenate %1, %2 in 1 : vector<2x2x128xf32>, vector<2x14x128xf32> -> vector<2x16x128xf32>
    %cst_2 = arith.constant 0.000000e+00 : f32
    %4 = vector.broadcast %cst_2 : f32 to vector<2x1x128xf32>
    %5 = vector.extract_strided_slice %0 {offsets = [0, 0, 0], sizes = [2, 15, 128], strides = [1, 1, 1]} : vector<2x16x128xf32> to vector<2x15x128xf32>
    %6 = tpu.concatenate %4, %5 in 1 : vector<2x1x128xf32>, vector<2x15x128xf32> -> vector<2x16x128xf32>
    %7 = tpu.concatenate %3, %6, %0 in 2 : vector<2x16x128xf32>, vector<2x16x128xf32>, vector<2x16x128xf32> -> vector<2x16x384xf32>
    %8 = vector.shape_cast %7 : vector<2x16x384xf32> to vector<32x384xf32>
    %9 = arith.truncf %8 : vector<32x384xf32> to vector<32x384xbf16>
    %c0_3 = arith.constant 0 : index
    %c0_4 = arith.constant 0 : index
    %10 = vector.load %arg2[%c0_3, %c0_4] : memref<384x128xbf16, #tpu.memory_space<vmem>>, vector<384x128xbf16>
    %cst_5 = arith.constant dense<0.000000e+00> : vector<32x128xf32>
    %11 = tpu.matmul %9, %10, %cst_5 {dimension_numbers = #tpu.dot_dimension_numbers<[1], [0], [0], [1], [0, 0, 1, 1], [], []>} : vector<32x384xbf16>, vector<384x128xbf16>, vector<32x128xf32> -> vector<32x128xf32>
    %c0_6 = arith.constant 0 : index
    %c0_7 = arith.constant 0 : index
    %12 = vector.load %arg3[%c0_6, %c0_7] : memref<1x128xf32, #tpu.memory_space<vmem>>, vector<1x128xf32>
    %13 = vector.broadcast %12 : vector<1x128xf32> to vector<32x128xf32>
    %14 = arith.addf %11, %13 : vector<32x128xf32>
    %cst_8 = arith.constant 0.000000e+00 : f32
    %15 = vector.broadcast %cst_8 : f32 to vector<32x128xf32>
    %16 = arith.maximumf %14, %15 : vector<32x128xf32>
    %17 = vector.shape_cast %16 : vector<32x128xf32> to vector<2x16x128xf32>
    %cst_9 = arith.constant 0.000000e+00 : f32
    %18 = vector.broadcast %cst_9 : f32 to vector<2x2x128xf32>
    %19 = vector.extract_strided_slice %17 {offsets = [0, 0, 0], sizes = [2, 14, 128], strides = [1, 1, 1]} : vector<2x16x128xf32> to vector<2x14x128xf32>
    %20 = tpu.concatenate %18, %19 in 1 : vector<2x2x128xf32>, vector<2x14x128xf32> -> vector<2x16x128xf32>
    %cst_10 = arith.constant 0.000000e+00 : f32
    %21 = vector.broadcast %cst_10 : f32 to vector<2x1x128xf32>
    %22 = vector.extract_strided_slice %17 {offsets = [0, 0, 0], sizes = [2, 15, 128], strides = [1, 1, 1]} : vector<2x16x128xf32> to vector<2x15x128xf32>
    %23 = tpu.concatenate %21, %22 in 1 : vector<2x1x128xf32>, vector<2x15x128xf32> -> vector<2x16x128xf32>
    %24 = tpu.concatenate %20, %23, %17 in 2 : vector<2x16x128xf32>, vector<2x16x128xf32>, vector<2x16x128xf32> -> vector<2x16x384xf32>
    %25 = vector.shape_cast %24 : vector<2x16x384xf32> to vector<32x384xf32>
    %26 = arith.truncf %25 : vector<32x384xf32> to vector<32x384xbf16>
    %c0_11 = arith.constant 0 : index
    %c0_12 = arith.constant 0 : index
    %27 = vector.load %arg4[%c0_11, %c0_12] : memref<384x128xbf16, #tpu.memory_space<vmem>>, vector<384x128xbf16>
    %cst_13 = arith.constant dense<0.000000e+00> : vector<32x128xf32>
    %28 = tpu.matmul %26, %27, %cst_13 {dimension_numbers = #tpu.dot_dimension_numbers<[1], [0], [0], [1], [0, 0, 1, 1], [], []>} : vector<32x384xbf16>, vector<384x128xbf16>, vector<32x128xf32> -> vector<32x128xf32>
    %c0_14 = arith.constant 0 : index
    %c0_15 = arith.constant 0 : index
    %29 = vector.load %arg5[%c0_14, %c0_15] : memref<1x128xf32, #tpu.memory_space<vmem>>, vector<1x128xf32>
    %30 = vector.broadcast %29 : vector<1x128xf32> to vector<32x128xf32>
    %31 = arith.addf %28, %30 : vector<32x128xf32>
    %cst_16 = arith.constant 0.000000e+00 : f32
    %32 = vector.broadcast %cst_16 : f32 to vector<32x128xf32>
    %33 = arith.maximumf %31, %32 : vector<32x128xf32>
    %34 = vector.shape_cast %0 : vector<2x16x128xf32> to vector<32x128xf32>
    %35 = arith.truncf %34 : vector<32x128xf32> to vector<32x128xbf16>
    %c0_17 = arith.constant 0 : index
    %c0_18 = arith.constant 0 : index
    %36 = vector.load %arg6[%c0_17, %c0_18] : memref<128x128xbf16, #tpu.memory_space<vmem>>, vector<128x128xbf16>
    %cst_19 = arith.constant dense<0.000000e+00> : vector<32x128xf32>
    %37 = tpu.matmul %35, %36, %cst_19 {dimension_numbers = #tpu.dot_dimension_numbers<[1], [0], [0], [1], [0, 0, 1, 1], [], []>} : vector<32x128xbf16>, vector<128x128xbf16>, vector<32x128xf32> -> vector<32x128xf32>
    %c0_20 = arith.constant 0 : index
    %c0_21 = arith.constant 0 : index
    %38 = vector.load %arg7[%c0_20, %c0_21] : memref<1x128xf32, #tpu.memory_space<vmem>>, vector<1x128xf32>
    %39 = vector.broadcast %38 : vector<1x128xf32> to vector<32x128xf32>
    %40 = arith.addf %37, %39 : vector<32x128xf32>
    %41 = arith.addf %33, %40 : vector<32x128xf32>
    %cst_22 = arith.constant 0.000000e+00 : f32
    %42 = vector.broadcast %cst_22 : f32 to vector<32x128xf32>
    %43 = arith.maximumf %41, %42 : vector<32x128xf32>
    %44 = vector.shape_cast %43 : vector<32x128xf32> to vector<2x16x128xf32>
    %c0_23 = arith.constant 0 : index
    %c0_24 = arith.constant 0 : index
    %c0_25 = arith.constant 0 : index
    %c0_26 = arith.constant 0 : index
    %45 = vector.load %arg12[%c0_23, %c0_24, %c0_25, %c0_26] : memref<2x2x16x128xf32, #tpu.memory_space<vmem>>, vector<1x2x16x128xf32>
    %46 = vector.shape_cast %45 : vector<1x2x16x128xf32> to vector<2x16x128xf32>
    %47 = vector.shape_cast %44 : vector<2x16x128xf32> to vector<1x2x16x128xf32>
    tpu.vector_store %arg12[%c0_23, %c0_24, %c0_25, %c0_26], %47 {strides = array<i32>} : memref<2x2x16x128xf32, #tpu.memory_space<vmem>>, vector<1x2x16x128xf32>,
    %cst_27 = arith.constant 0.000000e+00 : f32
    %48 = vector.broadcast %cst_27 : f32 to vector<2x4x128xf32>
    %49 = vector.extract_strided_slice %44 {offsets = [0, 0, 0], sizes = [2, 12, 128], strides = [1, 1, 1]} : vector<2x16x128xf32> to vector<2x12x128xf32>
    %50 = tpu.concatenate %48, %49 in 1 : vector<2x4x128xf32>, vector<2x12x128xf32> -> vector<2x16x128xf32>
    %cst_28 = arith.constant 0.000000e+00 : f32
    %51 = vector.broadcast %cst_28 : f32 to vector<2x2x128xf32>
    %52 = vector.extract_strided_slice %44 {offsets = [0, 0, 0], sizes = [2, 14, 128], strides = [1, 1, 1]} : vector<2x16x128xf32> to vector<2x14x128xf32>
    %53 = tpu.concatenate %51, %52 in 1 : vector<2x2x128xf32>, vector<2x14x128xf32> -> vector<2x16x128xf32>
    %54 = tpu.concatenate %50, %53, %44 in 2 : vector<2x16x128xf32>, vector<2x16x128xf32>, vector<2x16x128xf32> -> vector<2x16x384xf32>
    %55 = vector.shape_cast %54 : vector<2x16x384xf32> to vector<32x384xf32>
    %56 = arith.truncf %55 : vector<32x384xf32> to vector<32x384xbf16>
    %c0_29 = arith.constant 0 : index
    %c0_30 = arith.constant 0 : index
    %57 = vector.load %arg8[%c0_29, %c0_30] : memref<384x128xbf16, #tpu.memory_space<vmem>>, vector<384x128xbf16>
    %cst_31 = arith.constant dense<0.000000e+00> : vector<32x128xf32>
    %58 = tpu.matmul %56, %57, %cst_31 {dimension_numbers = #tpu.dot_dimension_numbers<[1], [0], [0], [1], [0, 0, 1, 1], [], []>} : vector<32x384xbf16>, vector<384x128xbf16>, vector<32x128xf32> -> vector<32x128xf32>
    %c0_32 = arith.constant 0 : index
    %c0_33 = arith.constant 0 : index
    %59 = vector.load %arg9[%c0_32, %c0_33] : memref<1x128xf32, #tpu.memory_space<vmem>>, vector<1x128xf32>
    %60 = vector.broadcast %59 : vector<1x128xf32> to vector<32x128xf32>
    %61 = arith.addf %58, %60 : vector<32x128xf32>
    %cst_34 = arith.constant 0.000000e+00 : f32
    %62 = vector.broadcast %cst_34 : f32 to vector<32x128xf32>
    %63 = arith.maximumf %61, %62 : vector<32x128xf32>
    %64 = vector.shape_cast %63 : vector<32x128xf32> to vector<2x16x128xf32>
    %cst_35 = arith.constant 0.000000e+00 : f32
    %65 = vector.broadcast %cst_35 : f32 to vector<2x4x128xf32>
    %66 = vector.extract_strided_slice %64 {offsets = [0, 0, 0], sizes = [2, 12, 128], strides = [1, 1, 1]} : vector<2x16x128xf32> to vector<2x12x128xf32>
    %67 = tpu.concatenate %65, %66 in 1 : vector<2x4x128xf32>, vector<2x12x128xf32> -> vector<2x16x128xf32>
    %cst_36 = arith.constant 0.000000e+00 : f32
    %68 = vector.broadcast %cst_36 : f32 to vector<2x2x128xf32>
    %69 = vector.extract_strided_slice %64 {offsets = [0, 0, 0], sizes = [2, 14, 128], strides = [1, 1, 1]} : vector<2x16x128xf32> to vector<2x14x128xf32>
    %70 = tpu.concatenate %68, %69 in 1 : vector<2x2x128xf32>, vector<2x14x128xf32> -> vector<2x16x128xf32>
    %71 = tpu.concatenate %67, %70, %64 in 2 : vector<2x16x128xf32>, vector<2x16x128xf32>, vector<2x16x128xf32> -> vector<2x16x384xf32>
    %72 = vector.shape_cast %71 : vector<2x16x384xf32> to vector<32x384xf32>
    %73 = arith.truncf %72 : vector<32x384xf32> to vector<32x384xbf16>
    %c0_37 = arith.constant 0 : index
    %c0_38 = arith.constant 0 : index
    %74 = vector.load %arg10[%c0_37, %c0_38] : memref<384x128xbf16, #tpu.memory_space<vmem>>, vector<384x128xbf16>
    %cst_39 = arith.constant dense<0.000000e+00> : vector<32x128xf32>
    %75 = tpu.matmul %73, %74, %cst_39 {dimension_numbers = #tpu.dot_dimension_numbers<[1], [0], [0], [1], [0, 0, 1, 1], [], []>} : vector<32x384xbf16>, vector<384x128xbf16>, vector<32x128xf32> -> vector<32x128xf32>
    %c0_40 = arith.constant 0 : index
    %c0_41 = arith.constant 0 : index
    %76 = vector.load %arg11[%c0_40, %c0_41] : memref<1x128xf32, #tpu.memory_space<vmem>>, vector<1x128xf32>
    %77 = vector.broadcast %76 : vector<1x128xf32> to vector<32x128xf32>
    %78 = arith.addf %75, %77 : vector<32x128xf32>
    %cst_42 = arith.constant 0.000000e+00 : f32
    %79 = vector.broadcast %cst_42 : f32 to vector<32x128xf32>
    %80 = arith.maximumf %78, %79 : vector<32x128xf32>
    %81 = vector.shape_cast %44 : vector<2x16x128xf32> to vector<32x128xf32>
    %82 = arith.addf %80, %81 : vector<32x128xf32>
    %cst_43 = arith.constant 0.000000e+00 : f32
    %83 = vector.broadcast %cst_43 : f32 to vector<32x128xf32>
    %84 = arith.maximumf %82, %83 : vector<32x128xf32>
    %85 = vector.shape_cast %84 : vector<32x128xf32> to vector<2x16x128xf32>
    %c1 = arith.constant 1 : index
    %c0_44 = arith.constant 0 : index
    %c0_45 = arith.constant 0 : index
    %c0_46 = arith.constant 0 : index
    %86 = vector.load %arg12[%c1, %c0_44, %c0_45, %c0_46] : memref<2x2x16x128xf32, #tpu.memory_space<vmem>>, vector<1x2x16x128xf32>
    %87 = vector.shape_cast %86 : vector<1x2x16x128xf32> to vector<2x16x128xf32>
    %88 = vector.shape_cast %85 : vector<2x16x128xf32> to vector<1x2x16x128xf32>
    tpu.vector_store %arg12[%c1, %c0_44, %c0_45, %c0_46], %88 {strides = array<i32>} : memref<2x2x16x128xf32, #tpu.memory_space<vmem>>, vector<1x2x16x128xf32>,
    return
  }
  func.func @transform_0(%arg0: i32) -> (i32, i32, i32) {
    %c0_i32 = arith.constant 0 : i32
    %c0_i32_0 = arith.constant 0 : i32
    %c0_i32_1 = arith.constant 0 : i32
    return %arg0, %c0_i32, %c0_i32_0 : i32, i32, i32
  }
  func.func @transform_1(%arg0: i32) -> (i32, i32) {
    %c0_i32 = arith.constant 0 : i32
    %c0_i32_0 = arith.constant 0 : i32
    %c0_i32_1 = arith.constant 0 : i32
    return %c0_i32, %c0_i32_0 : i32, i32
  }
  func.func @transform_2(%arg0: i32) -> (i32, i32) {
    %c0_i32 = arith.constant 0 : i32
    %c0_i32_0 = arith.constant 0 : i32
    %c0_i32_1 = arith.constant 0 : i32
    return %c0_i32, %c0_i32_0 : i32, i32
  }
  func.func @transform_3(%arg0: i32) -> (i32, i32) {
    %c0_i32 = arith.constant 0 : i32
    %c0_i32_0 = arith.constant 0 : i32
    %c0_i32_1 = arith.constant 0 : i32
    return %c0_i32, %c0_i32_0 : i32, i32
  }
  func.func @transform_4(%arg0: i32) -> (i32, i32) {
    %c0_i32 = arith.constant 0 : i32
    %c0_i32_0 = arith.constant 0 : i32
    %c0_i32_1 = arith.constant 0 : i32
    return %c0_i32, %c0_i32_0 : i32, i32
  }
  func.func @transform_5(%arg0: i32) -> (i32, i32) {
    %c0_i32 = arith.constant 0 : i32
    %c0_i32_0 = arith.constant 0 : i32
    %c0_i32_1 = arith.constant 0 : i32
    return %c0_i32, %c0_i32_0 : i32, i32
  }
  func.func @transform_6(%arg0: i32) -> (i32, i32) {
    %c0_i32 = arith.constant 0 : i32
    %c0_i32_0 = arith.constant 0 : i32
    %c0_i32_1 = arith.constant 0 : i32
    return %c0_i32, %c0_i32_0 : i32, i32
  }
  func.func @transform_7(%arg0: i32) -> (i32, i32) {
    %c0_i32 = arith.constant 0 : i32
    %c0_i32_0 = arith.constant 0 : i32
    %c0_i32_1 = arith.constant 0 : i32
    return %c0_i32, %c0_i32_0 : i32, i32
  }
  func.func @transform_8(%arg0: i32) -> (i32, i32) {
    %c0_i32 = arith.constant 0 : i32
    %c0_i32_0 = arith.constant 0 : i32
    %c0_i32_1 = arith.constant 0 : i32
    return %c0_i32, %c0_i32_0 : i32, i32
  }
  func.func @transform_9(%arg0: i32) -> (i32, i32) {
    %c0_i32 = arith.constant 0 : i32
    %c0_i32_0 = arith.constant 0 : i32
    %c0_i32_1 = arith.constant 0 : i32
    return %c0_i32, %c0_i32_0 : i32, i32
  }
  func.func @transform_10(%arg0: i32) -> (i32, i32) {
    %c0_i32 = arith.constant 0 : i32
    %c0_i32_0 = arith.constant 0 : i32
    %c0_i32_1 = arith.constant 0 : i32
    return %c0_i32, %c0_i32_0 : i32, i32
  }
  func.func @transform_11(%arg0: i32) -> (i32, i32, i32, i32) {
    %c0_i32 = arith.constant 0 : i32
    %c0_i32_0 = arith.constant 0 : i32
    %c0_i32_1 = arith.constant 0 : i32
    %c0_i32_2 = arith.constant 0 : i32
    return %c0_i32, %arg0, %c0_i32_0, %c0_i32_1 : i32, i32, i32, i32
  }
}

</mosaic_0001>

<bundles_post_ra>
// kernel: tpu_custom_call.1
= control target key start
LH: loop header
LB: loop body
LE: loop exit
PB: predicated region body
PF: predicated region fallthrough
CT: control target
= control target key end

     0   :  { %16 = vsyncpa [#allocation3], 0  ;;  %s2653_s0 = inlined_call_operand.hbm [shape: f32[2,16,128], index: 0, kind: input, shape index: {}]   ;;  %s2654_s1 = inlined_call_operand.hbm [shape: bf16[384,128], index: 1, kind: input, shape index: {}]   ;;  %s2655_s2 = inlined_call_operand.vmem [shape: f32[1,128], index: 2, kind: input, shape index: {}]   ;;  %s2656_s3 = inlined_call_operand.hbm [shape: bf16[384,128], index: 3, kind: input, shape index: {}]   ;;  %s2657_s4 = inlined_call_operand.vmem [shape: f32[1,128], index: 4, kind: input, shape index: {}]   ;;  %s2658_s5 = inlined_call_operand.hbm [shape: bf16[128,128], index: 5, kind: input, shape index: {}]   ;;  %s2659_s6 = inlined_call_operand.vmem [shape: f32[1,128], index: 6, kind: input, shape index: {}]   ;;  %s2660_s7 = inlined_call_operand.hbm [shape: bf16[384,128], index: 7, kind: input, shape index: {}]   ;;  %s2661_s8 = inlined_call_operand.vmem [shape: f32[1,128], index: 8, kind: input, shape index: {}]   ;;  %s2662_s9 = inlined_call_operand.hbm [shape: bf16[384,128], index: 9, kind: input, shape index: {}]   ;;  %s2663_s10 = inlined_call_operand.vmem [shape: f32[1,128], index: 10, kind: input, shape index: {}]   ;;  %s2664_s11 = inlined_call_operand.hbm [shape: f32[2,2,16,128], index: 11, kind: output, shape index: {}]  }
   0x1   :  { %17 = vsyncpa [#allocation6], 0 }
   0x2   :  { %18 = vsyncpa [#allocation9], 0 }
   0x3   :  { %19 = vsyncpa [#allocation12], 0 }
   0x4   :  { %20 = vsyncpa [#allocation4], 0  ;;  %s2349_s17 = smov [#allocation5]   ;;  %s2185_s21 = scalar_lea.hbm %s2654_s1, 3072 }
   0x5   :  { %s38_s18 = sshll.u32 %s2349_s17, 4  ;;  %p2186_p0 = scmp.ne.s32.totalorder %s2654_s1, %s2185_s21  ;;  %s39_s18 = int_to_ptr.vmem [resolvable:$true] %s38_s18 }
   0x6   :  { %p2189_p1 = scmp.lt.u32.totalorder %s2185_s21, %s2654_s1 }
   0x8   :  { %p2191_p2 = pnand %p2189_p1, %p2186_p0 }
   0xa   :  { %2194 = shalt.err (!%p2191_p2)
}
   0xb   :  { %s2195_s26 = scalar_lea.vmem %s39_s18, 3072  ;;  %p2200_p4 = scmp.lt.s32.totalorder %s39_s18, %s39_s18 }
   0xc   :  { %p2196_p3 = scmp.ne.s32.totalorder %s39_s18, %s2195_s26  ;;  %p2201_p5 = scmp.lt.s32.totalorder %s2195_s26, %s2195_s26 }
   0xe   :  { %p2202_p6 = por %p2201_p5, %p2200_p4 }
  0x10   :  { %p2203_p7 = pnand %p2202_p6, %p2196_p3 }
  0x12   :  { %2206 = shalt.err (!%p2203_p7)
}
  0x13   :  { %s2350_s27 = smov 64   ;;  %s2351_s28 = smov 4  }
  0x14   :  { %44 = dma.hbm_to_vmem [thread:$0]  %s2654_s1, 3072, %s39_s18, [#allocation6], %s2350_s27, %s2350_s27, %s2351_s28  }
  0x15   :  { %s2352_s12 = smov [#allocation8]   ;;  %s2353_s14 = smov [#allocation2]  }
  0x16   :  { %s66_s13 = sshll.u32 %s2352_s12, 4  ;;  %s26_s15 = sshll.u32 %s2353_s14, 4  ;;  %s67_s13 = int_to_ptr.vmem [resolvable:$true] %s66_s13  ;;  %s27_s15 = int_to_ptr.vmem [resolvable:$true] %s26_s15 }
  0x17   :  { %s2207_s19 = scalar_lea.hbm %s2658_s5, 1024 }
  0x18   :  { %p2208_p8 = scmp.ne.s32.totalorder %s2658_s5, %s2207_s19  ;;  %p2211_p9 = scmp.lt.u32.totalorder %s2207_s19, %s2658_s5 }
  0x1a   :  { %p2213_p10 = pnand %p2211_p9, %p2208_p8 }
  0x1c   :  { %2216 = shalt.err (!%p2213_p10)
}
  0x1d   :  { %s2217_s1 = scalar_lea.vmem %s67_s13, 1024  ;;  %p2222_p12 = scmp.lt.s32.totalorder %s67_s13, %s67_s13 }
  0x1e   :  { %p2218_p11 = scmp.ne.s32.totalorder %s67_s13, %s2217_s1  ;;  %p2223_p13 = scmp.lt.s32.totalorder %s2217_s1, %s2217_s1 }
  0x20   :  { %p2224_p0 = por %p2223_p13, %p2222_p12 }
  0x22   :  { %p2225_p1 = pnand %p2224_p0, %p2218_p11 }
  0x24   :  { %2228 = shalt.err (!%p2225_p1)
}
  0x25   :  { %72 = dma.hbm_to_vmem [thread:$0]  %s2658_s5, 1024, %s67_s13, [#allocation9], %s2350_s27, %s2350_s27, %s2351_s28  }
  0x26   :  { %s2229_s29 = scalar_lea.hbm %s2653_s0, 512 }
  0x27   :  { %p2230_p2 = scmp.ne.s32.totalorder %s2653_s0, %s2229_s29  ;;  %p2233_p3 = scmp.lt.u32.totalorder %s2229_s29, %s2653_s0 }
  0x29   :  { %p2235_p4 = pnand %p2233_p3, %p2230_p2 }
  0x2b   :  { %2238 = shalt.err (!%p2235_p4)
}
  0x2c   :  { %s2239_s17 = scalar_lea.vmem %s27_s15, 512  ;;  %p2244_p6 = scmp.lt.s32.totalorder %s27_s15, %s27_s15 }
  0x2d   :  { %p2240_p5 = scmp.ne.s32.totalorder %s27_s15, %s2239_s17  ;;  %p2245_p7 = scmp.lt.s32.totalorder %s2239_s17, %s2239_s17 }
  0x2f   :  { %p2246_p8 = por %p2245_p7, %p2244_p6 }
  0x31   :  { %p2247_p9 = pnand %p2246_p8, %p2240_p5 }
  0x33   :  { %2250 = shalt.err (!%p2247_p9)
}
  0x34   :  { %s2354_s5 = smov 128   ;;  %s2355_s13 = smov 8  }
  0x35   :  { %32 = dma.hbm_to_vmem [thread:$0]  %s2653_s0, 512, %s27_s15, [#allocation3], %s2354_s5, %s2354_s5, %s2355_s13  }
  0x36   :  { %s2356_s21 = smov [#allocation7]   ;;  %s2357_s23 = smov [#allocation10]  }
  0x37   :  { %s52_s22 = sshll.u32 %s2356_s21, 4  ;;  %s80_s1 = sshll.u32 %s2357_s23, 4  ;;  %s53_s22 = int_to_ptr.vmem [resolvable:$true] %s52_s22  ;;  %s81_s1 = int_to_ptr.vmem [resolvable:$true] %s80_s1 }
  0x38   :  { %s2251_s25 = scalar_lea.hbm %s2656_s3, 3072 }
  0x39   :  { %p2252_p10 = scmp.ne.s32.totalorder %s2656_s3, %s2251_s25  ;;  %p2255_p11 = scmp.lt.u32.totalorder %s2251_s25, %s2656_s3 }
  0x3b   :  { %p2257_p12 = pnand %p2255_p11, %p2252_p10 }
  0x3d   :  { %2260 = shalt.err (!%p2257_p12)
}
  0x3e   :  { %s2261_s0 = scalar_lea.vmem %s53_s22, 3072  ;;  %p2266_p0 = scmp.lt.s32.totalorder %s53_s22, %s53_s22 }
  0x3f   :  { %p2262_p13 = scmp.ne.s32.totalorder %s53_s22, %s2261_s0  ;;  %p2267_p1 = scmp.lt.s32.totalorder %s2261_s0, %s2261_s0 }
  0x41   :  { %p2268_p2 = por %p2267_p1, %p2266_p0 }
  0x43   :  { %p2269_p3 = pnand %p2268_p2, %p2262_p13 }
  0x45   :  { %2272 = shalt.err (!%p2269_p3)
}
  0x46   :  { %58 = dma.hbm_to_vmem [thread:$0]  %s2656_s3, 3072, %s53_s22, [#allocation6], %s2350_s27, %s2350_s27, %s2351_s28  }
  0x47   :  { %s2273_s19 = scalar_lea.hbm %s2660_s7, 3072 }
  0x48   :  { %p2274_p4 = scmp.ne.s32.totalorder %s2660_s7, %s2273_s19  ;;  %p2277_p5 = scmp.lt.u32.totalorder %s2273_s19, %s2660_s7 }
  0x4a   :  { %p2279_p6 = pnand %p2277_p5, %p2274_p4 }
  0x4c   :  { %2282 = shalt.err (!%p2279_p6)
}
  0x4d   :  { %s2283_s24 = scalar_lea.vmem %s81_s1, 3072  ;;  %p2288_p8 = scmp.lt.s32.totalorder %s81_s1, %s81_s1 }
  0x4e   :  { %p2284_p7 = scmp.ne.s32.totalorder %s81_s1, %s2283_s24  ;;  %p2289_p9 = scmp.lt.s32.totalorder %s2283_s24, %s2283_s24 }
  0x50   :  { %p2290_p10 = por %p2289_p9, %p2288_p8 }
  0x52   :  { %p2291_p11 = pnand %p2290_p10, %p2284_p7 }
  0x54   :  { %2294 = shalt.err (!%p2291_p11)
}
  0x55   :  { %86 = dma.hbm_to_vmem [thread:$0]  %s2660_s7, 3072, %s81_s1, [#allocation9], %s2350_s27, %s2350_s27, %s2351_s28  }
  0x56   :  { %s2358_s25 = smov [#allocation11]   ;;  %s2295_s12 = scalar_lea.hbm %s2662_s9, 3072 }
  0x57   :  { %s94_s26 = sshll.u32 %s2358_s25, 4  ;;  %p2296_p12 = scmp.ne.s32.totalorder %s2662_s9, %s2295_s12  ;;  %s95_s26 = int_to_ptr.vmem [resolvable:$true] %s94_s26 }
  0x58   :  { %p2299_p13 = scmp.lt.u32.totalorder %s2295_s12, %s2662_s9 }
  0x5a   :  { %p2301_p0 = pnand %p2299_p13, %p2296_p12 }
  0x5c   :  { %2304 = shalt.err (!%p2301_p0)
}
  0x5d   :  { %s2305_s17 = scalar_lea.vmem %s95_s26, 3072  ;;  %p2310_p2 = scmp.lt.s32.totalorder %s95_s26, %s95_s26 }
  0x5e   :  { %p2306_p1 = scmp.ne.s32.totalorder %s95_s26, %s2305_s17  ;;  %p2311_p3 = scmp.lt.s32.totalorder %s2305_s17, %s2305_s17 }
  0x60   :  { %p2312_p4 = por %p2311_p3, %p2310_p2 }
  0x62   :  { %p2313_p5 = pnand %p2312_p4, %p2306_p1 }
  0x64   :  { %2316 = shalt.err (!%p2313_p5)
}
  0x65   :  { %100 = dma.hbm_to_vmem [thread:$0]  %s2662_s9, 3072, %s95_s26, [#allocation12], %s2350_s27, %s2350_s27, %s2351_s28  }
  0x66   :  { %2339 = dma.done.wait [#allocation3], 512  }
  0x67   :  { %2340 = vsyncadd [#allocation3], 4294966784 }
  0x68   :  { %2341 = dma.done.wait [#allocation6], 6144  }
  0x69   :  { %2342 = vsyncadd [#allocation6], 4294961152 }
  0x6a   :  { %2343 = dma.done.wait [#allocation9], 4096  }
  0x6b   :  { %2344 = vsyncadd [#allocation9], 4294963200 }
  0x6c   :  { %2345 = dma.done.wait [#allocation12], 3072  }
  0x6d   :  { %2346 = vsyncadd [#allocation12], 4294964224  ;;  %v2081_v0 = vld [vmem:[#allocation5 + $0x40] sm:$0xff]   ;;  %v2084_v3 = vld [vmem:[#allocation5 + $0x48] sm:$0xff]   ;;  %vm143_vm0 = vcmask 1040384   ;;  %vm2359_vm2 = vmmov 1  }
  0x6e   :  { %v2082_v1 = vld [vmem:[#allocation5] sm:$0xff]   ;;  %1807 = vmatprep.subr.bf16.mxu0 %v2081_v0  ;;  %v2085_v4 = vld [vmem:[#allocation5 + $0x8] sm:$0xff]   ;;  %v2087_v6 = vld [vmem:[#allocation5 + $0x50] sm:$0xff]   ;;  %vm130_vm4 = vcmask 1041408   ;;  %vm934_vm7 = vcmask 1043456  }
  0x6f   :  { %v2083_v2 = vld [vmem:[#allocation5 + $0x80] sm:$0xff]   ;;  %1808 = vmatpush3.bf16.msra.mxu0 %v2082_v1  ;;  %v2086_v5 = vld [vmem:[#allocation5 + $0x88] sm:$0xff]   ;;  %v2088_v7 = vld [vmem:[#allocation5 + $0x10] sm:$0xff]  }
  0x70   :  { %1969 = vmatprep.subr.bf16.mxu1 %v2083_v2  ;;  %1809 = vmatprep.subr.bf16.mxu0 %v2084_v3  ;;  %v2089_v8 = vld [vmem:[#allocation5 + $0x90] sm:$0xff]   ;;  %v2090_v9 = vld [vmem:[#allocation5 + $0x58] sm:$0xff]   ;;  %v2093_v12 = vld [vmem:[#allocation5 + $0x60] sm:$0xff]  }
  0x71   :  { %1970 = vmatpush3.bf16.msra.mxu1 %v2083_v2  ;;  %v2091_v10 = vld [vmem:[#allocation5 + $0x18] sm:$0xff]   ;;  %v2095_v13 = vld [vmem:[#allocation5 + $0xa0] sm:$0xff]   ;;  %v2096_v15 = vld [vmem:[#allocation5 + $0x68] sm:$0xff]  }
  0x72   :  { %1971 = vmatprep.subr.bf16.mxu1 %v2086_v5  ;;  %v2092_v11 = vld [vmem:[#allocation5 + $0x98] sm:$0xff]   ;;  %v2094_v14 = vld [vmem:[#allocation5 + $0x20] sm:$0xff]   ;;  %vm1659_vm1 = vmneg %vm143_vm0 }
  0x73   :  { %1810 = vmatpush3.bf16.msra.mxu0 %v2085_v4  ;;  %v2098_v16 = vld [vmem:[#allocation5 + $0xa8] sm:$0xff]   ;;  %v2099_v18 = vld [vmem:[#allocation5 + $0x70] sm:$0xff]   ;;  %vm2513_vm3 = vmpackc.low %vm2359_vm2, %vm1659_vm1 }
  0x74   :  { %1811 = vmatprep.subr.bf16.mxu0 %v2087_v6  ;;  %v2097_v17 = vld [vmem:[#allocation5 + $0x28] sm:$0xff]   ;;  %v2101_v20 = vld [vmem:[#allocation5 + $0xb0] sm:$0xff]   ;;  %v2102_v22 = vld [vmem:[#allocation5 + $0x78] sm:$0xff]  }
  0x75   :  { %1972 = vmatpush3.bf16.msra.mxu1 %v2086_v5  ;;  %v2100_v21 = vld [vmem:[#allocation5 + $0x30] sm:$0xff]   ;;  %v122_v23 = vld [vmem:[#allocation2] sm:$0xff]  ;;  %v123_v24 = vld [vmem:[#allocation2 + $0x8] sm:$0xff] }
  0x76   :  { %1973 = vmatprep.subr.bf16.mxu1 %v2089_v8  ;;  %v2103_v25 = vld [vmem:[#allocation5 + $0x38] sm:$0xff]   ;;  %v131_v26 = vrot.slane %v122_v23, 6  ;;  %v132_v27 = vrot.slane %v123_v24, 6  ;;  %v144_v28 = vrot.slane %v122_v23, 7  ;;  %v145_v29 = vrot.slane %v123_v24, 7  ;;  %vm2518_vm5 = vmneg %vm130_vm4  ;;  %v124_v31 = vld [vmem:[#allocation2 + $0x10] sm:$0xff] }
  0x77   :  { %1812 = vmatpush3.bf16.msra.mxu0 %v2088_v7  ;;  %v2104_v32 = vld [vmem:[#allocation5 + $0xb8] sm:$0xff]   ;;  %v2522_v33 = vpack.c.bf16 %v123_v24, %v122_v23  ;;  %v147_v35 = vrot.slane %v124_v31, 7  ;;  %v2105_v39 = vld [vmem:[#allocation7 + $0x40] sm:$0xff]   ;;  %vm2530_vm6 = vmpackc.low %vm2359_vm2, %vm2518_vm5  ;;  %v134_v44 = vrot.slane %v124_v31, 6 }
  0x78   :  { %1813 = vmatprep.subr.bf16.mxu0 %v2090_v9  ;;  %v125_v34 = vld [vmem:[#allocation2 + $0x18] sm:$0xff]  ;;  %v146_v36 = vsel %vm143_vm0, %v144_v28, %v145_v29  ;;  %v133_v37 = vsel %vm130_vm4, %v131_v26, %v132_v27  ;;  %v2109_v45 = vld [vmem:[#allocation7 + $0x80] sm:$0xff]   ;;  %v2107_v50 = vld [vmem:[#allocation7 + $0x48] sm:$0xff]  }
  0x79   :  { %1974 = vmatpush3.bf16.msra.mxu1 %v2089_v8  ;;  %v148_v38 = vrot.slane %v125_v34, 7  ;;  %v1661_v40 = vpack.c.bf16 %v146_v36, %v144_v28  ;;  %1985 = vmatprep.mubr.bf16.mxu1 %v2522_v33  ;;  %v1665_v43 = vpack.c.bf16 %v133_v37, %v131_v26  ;;  %v135_v46 = vrot.slane %v125_v34, 6  ;;  %v2106_v48 = vld [vmem:[#allocation7] sm:$0xff]   ;;  %v2108_v51 = vld [vmem:[#allocation7 + $0x8] sm:$0xff]   ;;  %v2110_v54 = vld [vmem:[#allocation7 + $0x50] sm:$0xff]  }
  0x7a   :  { %1975 = vmatprep.subr.bf16.mxu1 %v2092_v11  ;;  %v2537_v49 = vpack.c.bf16 %v125_v34, %v124_v31  ;;  %v2112_v52 = vld [vmem:[#allocation7 + $0x88] sm:$0xff]   ;;  %v2115_v55 = vld [vmem:[#allocation7 + $0x90] sm:$0xff]   ;;  %v2113_v58 = vld [vmem:[#allocation7 + $0x58] sm:$0xff]  }
  0x7b   :  { %1814 = vmatpush3.bf16.msra.mxu0 %v2091_v10  ;;  %v149_v42 = vsel %vm143_vm0, %v147_v35, %v148_v38  ;;  %1662 = vmatprep.mubr.msk.bf16.mxu0 %vm2513_vm3, %v1661_v40  ;;  %v136_v53 = vsel %vm130_vm4, %v134_v44, %v135_v46  ;;  %v2111_v56 = vld [vmem:[#allocation7 + $0x10] sm:$0xff]   ;;  %v2114_v59 = vld [vmem:[#allocation7 + $0x18] sm:$0xff]   ;;  %v2116_v60 = vld [vmem:[#allocation7 + $0x60] sm:$0xff]  }
  0x7c   :  { %1815 = vmatprep.subr.bf16.mxu0 %v2093_v12  ;;  %v1669_v47 = vpack.c.bf16 %v149_v42, %v147_v35  ;;  %v1673_v57 = vpack.c.bf16 %v136_v53, %v134_v44  ;;  %v2117_v61 = vld [vmem:[#allocation7 + $0x20] sm:$0xff]   ;;  %v2118_v62 = vld [vmem:[#allocation7 + $0x98] sm:$0xff]   ;;  %v2119_v63 = vld [vmem:[#allocation7 + $0x68] sm:$0xff]  }
  0x7d   :  { %1976 = vmatpush3.bf16.msra.mxu1 %v2092_v11  ;;  %v2120_v0 = vld [vmem:[#allocation7 + $0x28] sm:$0xff]   ;;  %v2121_v1 = vld [vmem:[#allocation7 + $0xa0] sm:$0xff]   ;;  %v2122_v2 = vld [vmem:[#allocation7 + $0x70] sm:$0xff]  }
  0x7e   :  { %1977 = vmatprep.subr.bf16.mxu1 %v2095_v13  ;;  %v2123_v3 = vld [vmem:[#allocation7 + $0x30] sm:$0xff]   ;;  %v2124_v4 = vld [vmem:[#allocation7 + $0xa8] sm:$0xff]   ;;  %v2125_v5 = vld [vmem:[#allocation7 + $0x78] sm:$0xff]  }
  0x7f   :  { %1816 = vmatpush3.bf16.msra.mxu0 %v2094_v14  ;;  %v2126_v6 = vld [vmem:[#allocation7 + $0x38] sm:$0xff]   ;;  %v2127_v7 = vld [vmem:[#allocation7 + $0xb0] sm:$0xff]   ;;  %v2128_v8 = vld [vmem:[#allocation8] sm:$0xff]  }
  0x80   :  { %1817 = vmatprep.subr.bf16.mxu0 %v2096_v15  ;;  %v2129_v9 = vld [vmem:[#allocation7 + $0xb8] sm:$0xff]   ;;  %v1634_v12 = vld [vmem:[%s2655_s2] ss:$0 sm:$0xff]  ;;  %vm1754_vm8 = vmneg %vm934_vm7 }
  0x81   :  { %1978 = vmatpush3.bf16.msra.mxu1 %v2095_v13  ;;  %v2137_v19 = vld [vmem:[#allocation10 + $0x80] sm:$0xff]   ;;  %vm2600_vm9 = vmpackc.low %vm2359_vm2, %vm1754_vm8 }
  0x82   :  { %1979 = vmatprep.subr.bf16.mxu1 %v2098_v16 }
  0x83   :  { %1818 = vmatpush3.bf16.msra.mxu0 %v2097_v17 }
  0x84   :  { %1819 = vmatprep.subr.bf16.mxu0 %v2099_v18 }
  0x85   :  { %1980 = vmatpush3.bf16.msra.mxu1 %v2098_v16 }
  0x86   :  { %1981 = vmatprep.subr.bf16.mxu1 %v2101_v20 }
  0x87   :  { %1820 = vmatpush3.bf16.msra.mxu0 %v2100_v21 }
  0x88   :  { %1821 = vmatprep.subr.bf16.mxu0 %v2102_v22 }
  0x89   :  { %1982 = vmatpush3.bf16.msra.mxu1 %v2101_v20 }
  0x8a   :  { %1983 = vmatprep.subr.bf16.mxu1 %v2104_v32 }
  0x8b   :  { %1822 = vmatpush3.bf16.msra.mxu0 %v2103_v25 }
  0x8c   :  { %1845 = vmatprep.subr.bf16.mxu0 %v2105_v39 }
  0x8d   :  { %1984 = vmatpush3.bf16.msra.mxu1 %v2104_v32 }
  0x8e   :  { %1666 = vmatmul.mubr.msk.bf16.vlgmr.msra.gmra.mrb[0].mxu0 %vm2530_vm6, %v1665_v43  ;;  %1989 = vmatprep.subr.bf16.mxu1 %v2109_v45 }
  0x8f   :  { %1670 = vmatprep.mubr.msk.bf16.mxu0 %vm2513_vm3, %v1669_v47  ;;  %1846 = vmatpush3.bf16.msra.mxu0 %v2106_v48 }
  0x90   :  { %1986 = vmatmul.mubr.bf16.vlgmr.msra.gmra.mrb[0].mxu1 %v2537_v49  ;;  %1847 = vmatprep.subr.bf16.mxu0 %v2107_v50 }
  0x91   :  { %1990 = vmatpush3.bf16.msra.mxu1 %v2109_v45 }
  0x92   :  { %1991 = vmatprep.subr.bf16.mxu1 %v2112_v52 }
  0x93   :  { %1848 = vmatpush3.bf16.msra.mxu0 %v2108_v51  ;;  %v2130_v51 = vld [vmem:[#allocation8 + $0x8] sm:$0xff]  }
  0x94   :  { %1849 = vmatprep.subr.bf16.mxu0 %v2110_v54 }
  0x95   :  { %1992 = vmatpush3.bf16.msra.mxu1 %v2112_v52 }
  0x96   :  { %1674 = vmatmul.mubr.msk.bf16.gmra.mrb[4].mxu0 %vm2530_vm6, %v1673_v57  ;;  %1993 = vmatprep.subr.bf16.mxu1 %v2115_v55  ;;  %v2131_v57 = vld [vmem:[#allocation8 + $0x10] sm:$0xff]  }
  0x97   :  { %1850 = vmatpush3.bf16.msra.mxu0 %v2111_v56 }
  0x98   :  { %1851 = vmatprep.subr.bf16.mxu0 %v2113_v58 }
  0x99   :  { %1994 = vmatpush3.bf16.msra.mxu1 %v2115_v55 }
  0x9a   :  { %1995 = vmatprep.subr.bf16.mxu1 %v2118_v62 }
  0x9b   :  { %1852 = vmatpush3.bf16.msra.mxu0 %v2114_v59 }
  0x9c   :  { %1853 = vmatprep.subr.bf16.mxu0 %v2116_v60 }
  0x9d   :  { %1996 = vmatpush3.bf16.msra.mxu1 %v2118_v62 }
  0x9e   :  { %1997 = vmatprep.subr.bf16.mxu1 %v2121_v1 }
  0x9f   :  { %1854 = vmatpush3.bf16.msra.mxu0 %v2117_v61 }
  0xa0   :  { %1855 = vmatprep.subr.bf16.mxu0 %v2119_v63  ;;  %v2132_v63 = vld [vmem:[#allocation8 + $0x18] sm:$0xff]  }
  0xa1   :  { %1998 = vmatpush3.bf16.msra.mxu1 %v2121_v1  ;;  %v2134_v1 = vld [vmem:[#allocation8 + $0x28] sm:$0xff]  }
  0xa2   :  { %1999 = vmatprep.subr.bf16.mxu1 %v2124_v4 }
  0xa3   :  { %1856 = vmatpush3.bf16.msra.mxu0 %v2120_v0  ;;  %v2133_v0 = vld [vmem:[#allocation8 + $0x20] sm:$0xff]  }
  0xa4   :  { %1857 = vmatprep.subr.bf16.mxu0 %v2122_v2  ;;  %v2135_v2 = vld [vmem:[#allocation8 + $0x30] sm:$0xff]  }
  0xa5   :  { %2000 = vmatpush3.bf16.msra.mxu1 %v2124_v4  ;;  %v2139_v4 = vld [vmem:[#allocation10] sm:$0xff]  }
  0xa6   :  { %2001 = vmatprep.subr.bf16.mxu1 %v2127_v7 }
  0xa7   :  { %1858 = vmatpush3.bf16.msra.mxu0 %v2123_v3  ;;  %v2136_v3 = vld [vmem:[#allocation8 + $0x38] sm:$0xff]  }
  0xa8   :  { %1859 = vmatprep.subr.bf16.mxu0 %v2125_v5  ;;  %v2140_v5 = vld [vmem:[#allocation10 + $0x88] sm:$0xff]  }
  0xa9   :  { %2002 = vmatpush3.bf16.msra.mxu1 %v2127_v7  ;;  %v2143_v7 = vld [vmem:[#allocation10 + $0x90] sm:$0xff]  }
  0xaa   :  { %2003 = vmatprep.subr.bf16.mxu1 %v2129_v9 }
  0xab   :  { %1860 = vmatpush3.bf16.msra.mxu0 %v2126_v6  ;;  %v2141_v6 = vld [vmem:[#allocation10 + $0x48] sm:$0xff]  }
  0xac   :  { %2009 = vmatprep.subr.bf16.mxu0 %v2128_v8 }
  0xad   :  { %2004 = vmatpush3.bf16.msra.mxu1 %v2129_v9  ;;  %v2144_v9 = vld [vmem:[#allocation10 + $0x50] sm:$0xff]  }
 0x161   :  { %v1823_v10 = vpop.f32.mrb[0].mxu0 }
 0x162   :  { %v1824_v11 = vpop.f32.mrb[1].mxu0 }
 0x163   :  { %v1825_v13 = vadd.f32 %v1824_v11, %v1823_v10  ;;  %v1987_v14 = vpop.f32.mrb[0].mxu1  ;;  %v1826_v15 = vpop.f32.mrb[2].mxu0  ;;  %v2146_v10 = vld [vmem:[#allocation10 + $0x98] sm:$0xff]   ;;  %v2145_v11 = vld [vmem:[#allocation10 + $0x10] sm:$0xff]  }
 0x164   :  { %v444_v16 = vpop.f32.mrb[1].mxu1  ;;  %v1827_v17 = vpop.f32.mrb[3].mxu0 }
 0x165   :  { %v396_v18 = vadd.f32 %v1825_v13, %v1634_v12  ;;  %v1828_v20 = vadd.f32 %v1827_v17, %v1826_v15  ;;  %v1988_v21 = vpop.f32.mrb[2].mxu1  ;;  %v2148_v13 = vld [vmem:[#allocation10 + $0x18] sm:$0xff]   ;;  %v2151_v15 = vld [vmem:[#allocation10 + $0x20] sm:$0xff]   ;;  %v2153_v17 = vld [vmem:[#allocation10 + $0x68] sm:$0xff]  }
 0x166   :  { %v447_v22 = vpop.f32.mrb[3].mxu1 }
 0x167   :  { %v445_v23 = vadd.f32 %v444_v16, %v396_v18  ;;  %v399_v24 = vadd.f32 %v1828_v20, %v1634_v12  ;;  %v2152_v16 = vld [vmem:[#allocation10 + $0xa8] sm:$0xff]   ;;  %v2155_v20 = vld [vmem:[#allocation10 + $0xb0] sm:$0xff]  }
 0x168   :  { %v2154_v18 = vld [vmem:[#allocation10 + $0x28] sm:$0xff]  }
 0x169   :  { %v459_v25 = vmax.f32 %v445_v23, 0.0  ;;  %v448_v26 = vadd.f32 %v447_v22, %v399_v24  ;;  %v1829_v27 = vpop.f32.mrb[4].mxu0  ;;  %v2157_v22 = vld [vmem:[#allocation10 + $0x30] sm:$0xff]   ;;  %v2158_v23 = vld [vmem:[#allocation10 + $0xb8] sm:$0xff]  }
 0x16a   :  { %v1830_v28 = vpop.f32.mrb[5].mxu0  ;;  %v2159_v24 = vld [vmem:[#allocation10 + $0x78] sm:$0xff]  }
 0x16b   :  { %v460_v29 = vmax.f32 %v448_v26, 0.0  ;;  %v1831_v30 = vadd.f32 %v1830_v28, %v1829_v27  ;;  %v1832_v31 = vpop.f32.mrb[6].mxu0  ;;  %v467_v32 = vrot.slane %v459_v25, 6  ;;  %v479_v34 = vrot.slane %v459_v25, 7  ;;  %v2161_v26 = vld [vmem:[#allocation11 + $0x40] sm:$0xff]  }
 0x16c   :  { %v1833_v35 = vpop.f32.mrb[7].mxu0  ;;  %v2564_v27 = vld [vmem:[#allocation11 + $0x80] sm:$0xff]  }
 0x16d   :  { %v468_v36 = vrot.slane %v460_v29, 6  ;;  %v480_v37 = vrot.slane %v460_v29, 7  ;;  %v404_v38 = vadd.f32 %v1831_v30, %v1634_v12  ;;  %v1834_v39 = vadd.f32 %v1833_v35, %v1832_v31  ;;  %v1675_v30 = vld [vmem:[%s2657_s4] ss:$0 sm:$0xff] }
 0x16e   :  { %v493_v40 = vpack.c.bf16 %v460_v29, %v459_v25  ;;  %v2160_v25 = vld [vmem:[#allocation10 + $0x38] sm:$0xff]  }
 0x16f   :  { %v469_v42 = vsel %vm130_vm4, %v467_v32, %v468_v36  ;;  %v453_v43 = vadd.f32 %v1987_v14, %v404_v38  ;;  %v407_v44 = vadd.f32 %v1834_v39, %v1634_v12  ;;  %v481_v45 = vsel %vm143_vm0, %v479_v34, %v480_v37  ;;  %v2149_v12 = vld [vmem:[#allocation10 + $0xa0] sm:$0xff]  }
 0x170   :  { %v1706_v46 = vpack.c.bf16 %v469_v42, %v467_v32  ;;  %2005 = vmatprep.mubr.bf16.mxu1 %v493_v40  ;;  %v1702_v47 = vpack.c.bf16 %v481_v45, %v479_v34  ;;  %v2150_v14 = vld [vmem:[#allocation10 + $0x60] sm:$0xff]  }
 0x171   :  { %v461_v48 = vmax.f32 %v453_v43, 0.0  ;;  %v456_v50 = vadd.f32 %v1988_v21, %v407_v44  ;;  %v2156_v21 = vld [vmem:[#allocation10 + $0x70] sm:$0xff]  }
 0x172   :  { %1703 = vmatprep.mubr.msk.bf16.mxu0 %vm2513_vm3, %v1702_v47 }
 0x173   :  { %v462_v52 = vmax.f32 %v456_v50, 0.0  ;;  %1707 = vmatmul.mubr.msk.bf16.vlgmr.msra.gmra.mrb[8].mxu0 %vm2530_vm6, %v1706_v46  ;;  %v482_v53 = vrot.slane %v461_v48, 7  ;;  %v470_v58 = vrot.slane %v461_v48, 6 }
 0x174   :  { %2010 = vmatpush3.bf16.msra.mxu0 %v2128_v8  ;;  %v2142_v8 = vld [vmem:[#allocation10 + $0x8] sm:$0xff]  }
 0x175   :  { %v471_v54 = vrot.slane %v462_v52, 6  ;;  %v483_v55 = vrot.slane %v462_v52, 7  ;;  %2011 = vmatprep.subr.bf16.mxu0 %v2130_v51  ;;  %v496_v56 = vpack.c.bf16 %v462_v52, %v461_v48 }
 0x177   :  { %2006 = vmatmul.mubr.bf16.vlgmr.msra.gmra.mrb[4].mxu1 %v496_v56  ;;  %v484_v59 = vsel %vm143_vm0, %v482_v53, %v483_v55  ;;  %v472_v60 = vsel %vm130_vm4, %v470_v58, %v471_v54  ;;  %v1716_v56 = vld [vmem:[%s2659_s6] ss:$0 sm:$0xff] }
 0x178   :  { %2012 = vmatpush3.bf16.msra.mxu0 %v2130_v51  ;;  %v1710_v61 = vpack.c.bf16 %v484_v59, %v482_v53  ;;  %v1714_v62 = vpack.c.bf16 %v472_v60, %v470_v58 }
 0x179   :  { %2013 = vmatprep.subr.bf16.mxu0 %v2131_v57 }
 0x17a   :  { %1711 = vmatprep.mubr.msk.bf16.mxu0 %vm2513_vm3, %v1710_v61 }
 0x17b   :  { %1715 = vmatmul.mubr.msk.bf16.gmra.mrb[12].mxu0 %vm2530_vm6, %v1714_v62 }
 0x17c   :  { %2014 = vmatpush3.bf16.msra.mxu0 %v2131_v57  ;;  %2025 = vmatprep.mubr.bf16.mxu0 %v2522_v33  ;;  %v2138_v33 = vld [vmem:[#allocation10 + $0x40] sm:$0xff]  }
 0x17d   :  { %2015 = vmatprep.subr.bf16.mxu0 %v2132_v63  ;;  %1893 = vmatprep.subr.bf16.mxu1 %v2138_v33 }
 0x17e   :  { %1894 = vmatpush3.bf16.msra.mxu1 %v2139_v4 }
 0x17f   :  { %1895 = vmatprep.subr.bf16.mxu1 %v2141_v6 }
 0x180   :  { %2016 = vmatpush3.bf16.msra.mxu0 %v2132_v63 }
 0x181   :  { %2017 = vmatprep.subr.bf16.mxu0 %v2133_v0 }
 0x182   :  { %1896 = vmatpush3.bf16.msra.mxu1 %v2142_v8 }
 0x183   :  { %1897 = vmatprep.subr.bf16.mxu1 %v2144_v9 }
 0x184   :  { %2018 = vmatpush3.bf16.msra.mxu0 %v2133_v0 }
 0x185   :  { %2019 = vmatprep.subr.bf16.mxu0 %v2134_v1 }
 0x186   :  { %1898 = vmatpush3.bf16.msra.mxu1 %v2145_v11 }
 0x188   :  { %2020 = vmatpush3.bf16.msra.mxu0 %v2134_v1 }
 0x189   :  { %2021 = vmatprep.subr.bf16.mxu0 %v2135_v2 }
 0x18c   :  { %2022 = vmatpush3.bf16.msra.mxu0 %v2135_v2 }
 0x18d   :  { %2023 = vmatprep.subr.bf16.mxu0 %v2136_v3 }
 0x190   :  { %2024 = vmatpush3.bf16.msra.mxu0 %v2136_v3 }
 0x191   :  { %2029 = vmatprep.subr.bf16.mxu0 %v2137_v19 }
 0x193   :  { %2026 = vmatmul.mubr.bf16.vlgmr.msra.gmra.mrb[16].mxu0 %v2537_v49  ;;  %v2147_v49 = vld [vmem:[#allocation10 + $0x58] sm:$0xff]  }
 0x194   :  { %2030 = vmatpush3.bf16.msra.mxu0 %v2137_v19  ;;  %1899 = vmatprep.subr.bf16.mxu1 %v2147_v49 }
 0x195   :  { %2031 = vmatprep.subr.bf16.mxu0 %v2140_v5  ;;  %1900 = vmatpush3.bf16.msra.mxu1 %v2148_v13 }
 0x196   :  { %1901 = vmatprep.subr.bf16.mxu1 %v2150_v14 }
 0x198   :  { %2032 = vmatpush3.bf16.msra.mxu0 %v2140_v5 }
 0x199   :  { %2033 = vmatprep.subr.bf16.mxu0 %v2143_v7  ;;  %1902 = vmatpush3.bf16.msra.mxu1 %v2151_v15 }
 0x19a   :  { %1903 = vmatprep.subr.bf16.mxu1 %v2153_v17 }
 0x19c   :  { %2034 = vmatpush3.bf16.msra.mxu0 %v2143_v7 }
 0x19d   :  { %2035 = vmatprep.subr.bf16.mxu0 %v2146_v10  ;;  %1904 = vmatpush3.bf16.msra.mxu1 %v2154_v18  ;;  %v2167_v18 = vld [vmem:[#allocation11 + $0x88] sm:$0xff]  }
 0x19e   :  { %1905 = vmatprep.subr.bf16.mxu1 %v2156_v21 }
 0x1a0   :  { %2036 = vmatpush3.bf16.msra.mxu0 %v2146_v10 }
 0x1a1   :  { %2037 = vmatprep.subr.bf16.mxu0 %v2149_v12  ;;  %1906 = vmatpush3.bf16.msra.mxu1 %v2157_v22 }
 0x1a2   :  { %1907 = vmatprep.subr.bf16.mxu1 %v2159_v24 }
 0x1a4   :  { %2038 = vmatpush3.bf16.msra.mxu0 %v2149_v12 }
 0x1a5   :  { %2039 = vmatprep.subr.bf16.mxu0 %v2152_v16  ;;  %1908 = vmatpush3.bf16.msra.mxu1 %v2160_v25 }
 0x1a6   :  { %1931 = vmatprep.subr.bf16.mxu1 %v2161_v26  ;;  %v2162_v26 = vld [vmem:[#allocation11] sm:$0xff]  }
 0x1a8   :  { %2040 = vmatpush3.bf16.msra.mxu0 %v2152_v16 }
 0x1a9   :  { %2041 = vmatprep.subr.bf16.mxu0 %v2155_v20 }
 0x1ac   :  { %2042 = vmatpush3.bf16.msra.mxu0 %v2155_v20 }
 0x1ad   :  { %2043 = vmatprep.subr.bf16.mxu0 %v2158_v23 }
 0x1b0   :  { %2044 = vmatpush3.bf16.msra.mxu0 %v2158_v23 }
 0x1b1   :  { %2049 = vmatprep.subr.bf16.mxu0 %v2564_v27 }
 0x246   :  { %v1861_v28 = vpop.f32.mrb[8].mxu0 }
 0x247   :  { %v1862_v29 = vpop.f32.mrb[9].mxu0 }
 0x248   :  { %v1863_v31 = vadd.f32 %v1862_v29, %v1861_v28  ;;  %v1864_v32 = vpop.f32.mrb[10].mxu0  ;;  %v2163_v28 = vld [vmem:[#allocation11 + $0x48] sm:$0xff]  }
 0x249   :  { %v1865_v34 = vpop.f32.mrb[11].mxu0 }
 0x24a   :  { %v1866_v35 = vadd.f32 %v1865_v34, %v1864_v32  ;;  %v2007_v36 = vpop.f32.mrb[4].mxu1  ;;  %v731_v37 = vadd.f32 %v1863_v31, %v1675_v30  ;;  %v2165_v32 = vld [vmem:[#allocation11 + $0x8] sm:$0xff]   ;;  %v2166_v34 = vld [vmem:[#allocation11 + $0x50] sm:$0xff]  }
 0x24b   :  { %v779_v38 = vpop.f32.mrb[5].mxu1 }
 0x24c   :  { %v780_v39 = vadd.f32 %v779_v38, %v731_v37  ;;  %v2008_v40 = vpop.f32.mrb[6].mxu1  ;;  %v734_v42 = vadd.f32 %v1866_v35, %v1675_v30  ;;  %v2168_v35 = vld [vmem:[#allocation11 + $0x10] sm:$0xff]   ;;  %v2169_v37 = vld [vmem:[#allocation11 + $0x58] sm:$0xff]  }
 0x24d   :  { %v782_v43 = vpop.f32.mrb[7].mxu1  ;;  %v2170_v38 = vld [vmem:[#allocation11 + $0x90] sm:$0xff]  }
 0x24e   :  { %v783_v44 = vadd.f32 %v782_v43, %v734_v42  ;;  %v1867_v45 = vpop.f32.mrb[12].mxu0  ;;  %v794_v61 = vmax.f32 %v780_v39, 0.0  ;;  %v2171_v39 = vld [vmem:[#allocation11 + $0x18] sm:$0xff]   ;;  %v2174_v43 = vld [vmem:[#allocation11 + $0x20] sm:$0xff]  }
 0x24f   :  { %v1868_v46 = vpop.f32.mrb[13].mxu0  ;;  %v2173_v42 = vld [vmem:[#allocation11 + $0x98] sm:$0xff]  }
 0x250   :  { %v1869_v47 = vadd.f32 %v1868_v46, %v1867_v45  ;;  %v1870_v48 = vpop.f32.mrb[14].mxu0  ;;  %v795_v19 = vmax.f32 %v783_v44, 0.0  ;;  %v2175_v44 = vld [vmem:[#allocation11 + $0x68] sm:$0xff]   ;;  %v2176_v45 = vld [vmem:[#allocation11 + $0xa0] sm:$0xff]  }
 0x251   :  { %v1871_v50 = vpop.f32.mrb[15].mxu0  ;;  %v2177_v46 = vld [vmem:[#allocation11 + $0x28] sm:$0xff]  }
 0x252   :  { %v739_v51 = vadd.f32 %v1869_v47, %v1675_v30  ;;  %v1872_v52 = vadd.f32 %v1871_v50, %v1870_v48  ;;  %v2178_v47 = vld [vmem:[#allocation11 + $0x70] sm:$0xff]   ;;  %v2179_v48 = vld [vmem:[#allocation11 + $0xa8] sm:$0xff]  }
 0x253   :  { %v2180_v50 = vld [vmem:[#allocation11 + $0x30] sm:$0xff]  }
 0x254   :  { %v788_v53 = vadd.f32 %v2007_v36, %v739_v51  ;;  %v742_v54 = vadd.f32 %v1872_v52, %v1675_v30  ;;  %v2181_v51 = vld [vmem:[#allocation11 + $0x78] sm:$0xff]   ;;  %v2182_v52 = vld [vmem:[#allocation11 + $0xb0] sm:$0xff]  }
 0x256   :  { %v791_v55 = vadd.f32 %v2008_v40, %v742_v54  ;;  %v796_v58 = vmax.f32 %v788_v53, 0.0  ;;  %v2172_v40 = vld [vmem:[#allocation11 + $0x60] sm:$0xff]   ;;  %v2183_v53 = vld [vmem:[#allocation11 + $0x38] sm:$0xff]  }
 0x257   :  { %v2184_v54 = vld [vmem:[#allocation11 + $0xb8] sm:$0xff]  }
 0x258   :  { %v797_v1 = vmax.f32 %v791_v55, 0.0 }
 0x266   :  { %v2027_v57 = vpop.f32.mrb[16].mxu0 }
 0x267   :  { %v912_v59 = vadd.f32 %v2027_v57, %v1716_v56  ;;  %v903_v60 = vpop.f32.mrb[17].mxu0 }
 0x268   :  { %v904_v62 = vadd.f32 %v1716_v56, %v903_v60  ;;  %v2028_v63 = vpop.f32.mrb[18].mxu0  ;;  %v1725_v60 = vld [vmem:[%s2661_s8] ss:$0 sm:$0xff] }
 0x269   :  { %v920_v0 = vadd.f32 %v912_v59, %v796_v58  ;;  %v915_v2 = vadd.f32 %v2028_v63, %v1716_v56  ;;  %v906_v3 = vpop.f32.mrb[19].mxu0 }
 0x26a   :  { %v918_v33 = vadd.f32 %v904_v62, %v794_v61  ;;  %v907_v4 = vadd.f32 %v1716_v56, %v906_v3 }
 0x26b   :  { %v2573_v5 = vmax.f32 %v920_v0, 0.0  ;;  %v921_v6 = vadd.f32 %v915_v2, %v797_v1 }
 0x26c   :  { %v2575_v7 = vmax.f32 %v918_v33, 0.0  ;;  %v919_v8 = vadd.f32 %v907_v4, %v795_v19 }
 0x26d   :  { %928 = vst [vmem:[#allocation13 + $0x10] sm:$0xff] %v2573_v5  ;;  %v2578_v9 = vmax.f32 %v921_v6, 0.0  ;;  %v950_v49 = vrot.slane %v2573_v5, 6  ;;  %v938_v31 = vrot.slane %v2573_v5, 4 }
 0x26e   :  { %926 = vst [vmem:[#allocation13] sm:$0xff] %v2575_v7  ;;  %v2581_v10 = vmax.f32 %v919_v8, 0.0  ;;  %v947_v11 = vrot.slane %v2575_v7, 6  ;;  %v935_v16 = vrot.slane %v2575_v7, 4 }
 0x26f   :  { %929 = vst [vmem:[#allocation13 + $0x18] sm:$0xff] %v2578_v9  ;;  %v951_v12 = vrot.slane %v2578_v9, 6  ;;  %v964_v17 = vpack.c.bf16 %v2578_v9, %v2573_v5  ;;  %v939_v30 = vrot.slane %v2578_v9, 4 }
 0x270   :  { %927 = vst [vmem:[#allocation13 + $0x8] sm:$0xff] %v2581_v10  ;;  %v936_v13 = vrot.slane %v2581_v10, 4  ;;  %v961_v14 = vpack.c.bf16 %v2581_v10, %v2575_v7  ;;  %v948_v15 = vrot.slane %v2581_v10, 6 }
 0x271   :  { %v952_v22 = vsel %vm130_vm4, %v950_v49, %v951_v12 }
 0x272   :  { %2045 = vmatprep.mubr.bf16.mxu0 %v961_v14  ;;  %v949_v20 = vsel %vm130_vm4, %v947_v11, %v948_v15  ;;  %v937_v21 = vsel %vm934_vm7, %v935_v16, %v936_v13  ;;  %v1760_v29 = vpack.c.bf16 %v952_v22, %v950_v49 }
 0x273   :  { %2046 = vmatmul.mubr.bf16.vlgmr.msra.gmra.mrb[20].mxu0 %v964_v17  ;;  %v1752_v23 = vpack.c.bf16 %v949_v20, %v947_v11  ;;  %v1756_v25 = vpack.c.bf16 %v937_v21, %v935_v16 }
 0x274   :  { %2050 = vmatpush3.bf16.msra.mxu0 %v2564_v27  ;;  %v940_v27 = vsel %vm934_vm7, %v938_v31, %v939_v30 }
 0x275   :  { %1753 = vmatprep.mubr.msk.bf16.mxu1 %vm2530_vm6, %v1752_v23  ;;  %2051 = vmatprep.subr.bf16.mxu0 %v2167_v18  ;;  %v1764_v36 = vpack.c.bf16 %v940_v27, %v938_v31 }
 0x276   :  { %1757 = vmatmul.mubr.msk.bf16.vlgmr.msra.gmra.mrb[8].mxu1 %vm2600_vm9, %v1756_v25 }
 0x277   :  { %1761 = vmatprep.mubr.msk.bf16.mxu1 %vm2530_vm6, %v1760_v29  ;;  %1932 = vmatpush3.bf16.msra.mxu1 %v2162_v26 }
 0x278   :  { %1933 = vmatprep.subr.bf16.mxu1 %v2163_v28  ;;  %2052 = vmatpush3.bf16.msra.mxu0 %v2167_v18 }
 0x279   :  { %2053 = vmatprep.subr.bf16.mxu0 %v2170_v38 }
 0x27b   :  { %1934 = vmatpush3.bf16.msra.mxu1 %v2165_v32 }
 0x27c   :  { %1935 = vmatprep.subr.bf16.mxu1 %v2166_v34  ;;  %2054 = vmatpush3.bf16.msra.mxu0 %v2170_v38 }
 0x27d   :  { %2055 = vmatprep.subr.bf16.mxu0 %v2173_v42 }
 0x27e   :  { %1765 = vmatmul.mubr.msk.bf16.gmra.mrb[12].mxu1 %vm2600_vm9, %v1764_v36 }
 0x27f   :  { %1936 = vmatpush3.bf16.msra.mxu1 %v2168_v35 }
 0x280   :  { %1937 = vmatprep.subr.bf16.mxu1 %v2169_v37  ;;  %2056 = vmatpush3.bf16.msra.mxu0 %v2173_v42 }
 0x281   :  { %2057 = vmatprep.subr.bf16.mxu0 %v2176_v45 }
 0x283   :  { %1938 = vmatpush3.bf16.msra.mxu1 %v2171_v39 }
 0x284   :  { %1939 = vmatprep.subr.bf16.mxu1 %v2172_v40  ;;  %2058 = vmatpush3.bf16.msra.mxu0 %v2176_v45  ;;  %v1766_v45 = vld [vmem:[%s2663_s10] ss:$0 sm:$0xff]  ;;  %s2360_s10 = smov [#allocation13]  }
 0x285   :  { %2059 = vmatprep.subr.bf16.mxu0 %v2179_v48  ;;  %s1619_s23 = sshll.u32 %s2360_s10, 4  ;;  %s1620_s23 = int_to_ptr.vmem [resolvable:$true] %s1619_s23 }
 0x286   :  { %s2317_s18 = scalar_lea.vmem %s1620_s23, 1024  ;;  %p2322_p7 = scmp.lt.s32.totalorder %s1620_s23, %s1620_s23 }
 0x287   :  { %1940 = vmatpush3.bf16.msra.mxu1 %v2174_v43  ;;  %p2318_p6 = scmp.ne.s32.totalorder %s1620_s23, %s2317_s18  ;;  %p2323_p8 = scmp.lt.s32.totalorder %s2317_s18, %s2317_s18 }
 0x288   :  { %1941 = vmatprep.subr.bf16.mxu1 %v2175_v44  ;;  %2060 = vmatpush3.bf16.msra.mxu0 %v2179_v48 }
 0x289   :  { %2061 = vmatprep.subr.bf16.mxu0 %v2182_v52  ;;  %p2324_p9 = por %p2323_p8, %p2322_p7 }
 0x28b   :  { %1942 = vmatpush3.bf16.msra.mxu1 %v2177_v46  ;;  %p2325_p10 = pnand %p2324_p9, %p2318_p6 }
 0x28c   :  { %1943 = vmatprep.subr.bf16.mxu1 %v2178_v47  ;;  %2062 = vmatpush3.bf16.msra.mxu0 %v2182_v52 }
 0x28d   :  { %2063 = vmatprep.subr.bf16.mxu0 %v2184_v54 }
 0x28f   :  { %1944 = vmatpush3.bf16.msra.mxu1 %v2180_v50 }
 0x290   :  { %1945 = vmatprep.subr.bf16.mxu1 %v2181_v51  ;;  %2064 = vmatpush3.bf16.msra.mxu0 %v2184_v54 }
 0x293   :  { %1946 = vmatpush3.bf16.msra.mxu1 %v2183_v53 }
 0x346   :  { %v2047_v55 = vpop.f32.mrb[20].mxu0 }
 0x347   :  { %v1247_v56 = vpop.f32.mrb[21].mxu0 }
 0x348   :  { %v2048_v57 = vpop.f32.mrb[22].mxu0 }
 0x349   :  { %v1909_v58 = vpop.f32.mrb[8].mxu1  ;;  %v1250_v59 = vpop.f32.mrb[23].mxu0 }
 0x34a   :  { %v1910_v61 = vpop.f32.mrb[9].mxu1 }
 0x34b   :  { %v1911_v62 = vadd.f32 %v1910_v61, %v1909_v58  ;;  %v1912_v63 = vpop.f32.mrb[10].mxu1 }
 0x34c   :  { %v1913_v0 = vpop.f32.mrb[11].mxu1 }
 0x34d   :  { %v1199_v1 = vadd.f32 %v1911_v62, %v1725_v60  ;;  %v1914_v2 = vadd.f32 %v1913_v0, %v1912_v63 }
 0x34f   :  { %v1248_v3 = vadd.f32 %v1247_v56, %v1199_v1  ;;  %v1202_v19 = vadd.f32 %v1914_v2, %v1725_v60 }
 0x351   :  { %v1262_v33 = vmax.f32 %v1248_v3, 0.0  ;;  %v1251_v4 = vadd.f32 %v1250_v59, %v1202_v19  ;;  %v1915_v6 = vpop.f32.mrb[12].mxu1 }
 0x352   :  { %v1916_v8 = vpop.f32.mrb[13].mxu1 }
 0x353   :  { %v1263_v11 = vmax.f32 %v1251_v4, 0.0  ;;  %v1917_v49 = vadd.f32 %v1916_v8, %v1915_v6  ;;  %v1918_v12 = vpop.f32.mrb[14].mxu1  ;;  %v1270_v13 = vrot.slane %v1262_v33, 4  ;;  %v1282_v15 = vrot.slane %v1262_v33, 6 }
 0x354   :  { %v1919_v14 = vpop.f32.mrb[15].mxu1 }
 0x355   :  { %v1271_v16 = vrot.slane %v1263_v11, 4  ;;  %v1283_v17 = vrot.slane %v1263_v11, 6  ;;  %v1207_v18 = vadd.f32 %v1917_v49, %v1725_v60  ;;  %v1920_v20 = vadd.f32 %v1919_v14, %v1918_v12 }
 0x356   :  { %v1296_v21 = vpack.c.bf16 %v1263_v11, %v1262_v33 }
 0x357   :  { %v1272_v22 = vsel %vm934_vm7, %v1270_v13, %v1271_v16  ;;  %v1256_v23 = vadd.f32 %v2047_v55, %v1207_v18  ;;  %v1210_v25 = vadd.f32 %v1920_v20, %v1725_v60  ;;  %v1284_v26 = vsel %vm130_vm4, %v1282_v15, %v1283_v17 }
 0x358   :  { %v1797_v28 = vpack.c.bf16 %v1272_v22, %v1270_v13  ;;  %2065 = vmatprep.mubr.bf16.mxu0 %v1296_v21  ;;  %v1793_v29 = vpack.c.bf16 %v1284_v26, %v1282_v15 }
 0x359   :  { %v1264_v30 = vmax.f32 %v1256_v23, 0.0  ;;  %v1259_v31 = vadd.f32 %v2048_v57, %v1210_v25 }
 0x35a   :  { %1794 = vmatprep.mubr.msk.bf16.mxu1 %vm2530_vm6, %v1793_v29 }
 0x35b   :  { %v1265_v32 = vmax.f32 %v1259_v31, 0.0  ;;  %1798 = vmatmul.mubr.msk.bf16.vlgmr.msra.gmra.mrb[16].mxu1 %vm2600_vm9, %v1797_v28  ;;  %v1285_v34 = vrot.slane %v1264_v30, 6  ;;  %v1273_v37 = vrot.slane %v1264_v30, 4 }
 0x35d   :  { %v1274_v27 = vrot.slane %v1265_v32, 4  ;;  %v1286_v35 = vrot.slane %v1265_v32, 6  ;;  %v1299_v36 = vpack.c.bf16 %v1265_v32, %v1264_v30 }
 0x35f   :  { %2066 = vmatmul.mubr.bf16.vlgmr.msra.gmra.mrb[24].mxu0 %v1299_v36  ;;  %v1287_v38 = vsel %vm130_vm4, %v1285_v34, %v1286_v35  ;;  %v1275_v39 = vsel %vm934_vm7, %v1273_v37, %v1274_v27 }
 0x360   :  { %v1801_v40 = vpack.c.bf16 %v1287_v38, %v1285_v34  ;;  %v1805_v42 = vpack.c.bf16 %v1275_v39, %v1273_v37 }
 0x362   :  { %1802 = vmatprep.mubr.msk.bf16.mxu1 %vm2530_vm6, %v1801_v40 }
 0x363   :  { %1806 = vmatmul.mubr.msk.bf16.gmra.mrb[20].mxu1 %vm2600_vm9, %v1805_v42 }
 0x42e   :  { %v1947_v43 = vpop.f32.mrb[16].mxu1 }
 0x42f   :  { %v1948_v44 = vpop.f32.mrb[17].mxu1 }
 0x430   :  { %v1949_v46 = vadd.f32 %v1948_v44, %v1947_v43  ;;  %v1950_v47 = vpop.f32.mrb[18].mxu1 }
 0x431   :  { %v1951_v48 = vpop.f32.mrb[19].mxu1 }
 0x432   :  { %v1952_v50 = vadd.f32 %v1951_v48, %v1950_v47  ;;  %v2067_v51 = vpop.f32.mrb[24].mxu0  ;;  %v1534_v52 = vadd.f32 %v1949_v46, %v1766_v45 }
 0x433   :  { %v1582_v53 = vpop.f32.mrb[25].mxu0 }
 0x434   :  { %v1583_v54 = vadd.f32 %v1582_v53, %v1534_v52  ;;  %v2068_v55 = vpop.f32.mrb[26].mxu0  ;;  %v1537_v41 = vadd.f32 %v1952_v50, %v1766_v45 }
 0x435   :  { %v1585_v56 = vpop.f32.mrb[27].mxu0 }
 0x436   :  { %v1597_v57 = vmax.f32 %v1583_v54, 0.0  ;;  %v1586_v24 = vadd.f32 %v1585_v56, %v1537_v41  ;;  %v1953_v58 = vpop.f32.mrb[20].mxu1 }
 0x437   :  { %v1954_v59 = vpop.f32.mrb[21].mxu1 }
 0x438   :  { %v1601_v60 = vadd.f32 %v1597_v57, %v2575_v7  ;;  %v1598_v61 = vmax.f32 %v1586_v24, 0.0  ;;  %v1955_v62 = vadd.f32 %v1954_v59, %v1953_v58  ;;  %v1956_v63 = vpop.f32.mrb[22].mxu1 }
 0x439   :  { %v1957_v0 = vpop.f32.mrb[23].mxu1 }
 0x43a   :  { %v1605_v1 = vmax.f32 %v1601_v60, 0.0  ;;  %v1602_v2 = vadd.f32 %v1598_v61, %v2581_v10  ;;  %v1542_v3 = vadd.f32 %v1955_v62, %v1766_v45  ;;  %v1958_v19 = vadd.f32 %v1957_v0, %v1956_v63 }
 0x43c   :  { %1610 = vst [vmem:[#allocation13 + $0x20] sm:$0xff] %v1605_v1  ;;  %v1606_v33 = vmax.f32 %v1602_v2, 0.0  ;;  %v1591_v4 = vadd.f32 %v2067_v51, %v1542_v3  ;;  %v1545_v6 = vadd.f32 %v1958_v19, %v1766_v45 }
 0x43e   :  { %1611 = vst [vmem:[#allocation13 + $0x28] sm:$0xff] %v1606_v33  ;;  %v1599_v8 = vmax.f32 %v1591_v4, 0.0  ;;  %v1594_v11 = vadd.f32 %v2068_v55, %v1545_v6 }
 0x440   :  { %v1603_v49 = vadd.f32 %v1599_v8, %v2573_v5  ;;  %v1600_v12 = vmax.f32 %v1594_v11, 0.0 }
 0x442   :  { %v1607_v7 = vmax.f32 %v1603_v49, 0.0  ;;  %v1604_v13 = vadd.f32 %v1600_v12, %v2578_v9 }
 0x444   :  { %1612 = vst [vmem:[#allocation13 + $0x30] sm:$0xff] %v1607_v7  ;;  %v1608_v14 = vmax.f32 %v1604_v13, 0.0 }
 0x446   :  { %1613 = vst [vmem:[#allocation13 + $0x38] sm:$0xff] %v1608_v14 }
 0x447   :  { %2328 = shalt.err (!%p2325_p10)
}
 0x448   :  { %s2329_s22 = scalar_lea.hbm %s2664_s11, 1024 }
 0x449   :  { %p2330_p11 = scmp.ne.s32.totalorder %s2664_s11, %s2329_s22  ;;  %p2333_p12 = scmp.lt.u32.totalorder %s2329_s22, %s2664_s11 }
 0x44b   :  { %p2335_p13 = pnand %p2333_p12, %p2330_p11 }
 0x44d   :  { %2338 = shalt.err (!%p2335_p13)
}
 0x44e   :  { %1625 = dma.vmem_to_hbm [thread:$0]  %s1620_s23, 1024, %s2664_s11, [#allocation4], %s2354_s5, %s2354_s5, %s2355_s13  }
 0x44f   :  { %2347 = dma.done.wait [#allocation4], 1024  }
 0x450   :  { %2348 = vsyncadd [#allocation4], 4294966272 }
 0x451   :  { %1629 = vsyncpa [#allocation3], 1 }
 0x452   :  { %1630 = vsyncpa [#allocation6], 1 }
 0x453   :  { %1631 = vsyncpa [#allocation9], 1 }
 0x454   :  { %1632 = vsyncpa [#allocation12], 1 }
 0x455   :  { %1633 = vsyncpa [#allocation4], 1 }

</bundles_post_ra>
